<compile_context>
chip_gen: v7x
topology: tpu7x:2x2x1
jax: 0.10.0
libtpu: 0.0.40
codegen_flags: <defaults>
</compile_context>

<pallas_src>
import jax
import jax.numpy as jnp
import numpy as np
from jax import lax
from jax.experimental import pallas as pl
from jax.experimental.pallas import tpu as pltpu


def _round_up(x, m):
    return ((x + m - 1) // m) * m


def _lm_head_logprob_kernel(h_ref, w_ref, b_ref, tgt_ref, out_ref,
                            m_s, l_s, t_s):
    """One (row-tile i, vocab-tile v) grid step.

    Transposed layout: token positions live on the lane axis (TM lanes),
    vocab on the sublane axis (TV sublanes).

    h_ref:   (H, TM)    bf16  hidden states (transposed), full hidden dim
    w_ref:   (TV, H)    bf16  lm_head weight tile (vocab-major), streamed
    b_ref:   (TV, 1)    f32   lm_head bias tile (padded vocab rows = -1e30)
    tgt_ref: (1, 1, TM) int32 target (next) token id per position
    out_ref: (1, 1, TM) f32   log p(target | position)   (lane-dense)
    m_s, l_s, t_s: (1, TM) f32 scratch: running max, running sum-exp,
                   accumulated target logit (online / flash softmax state).
    """
    v = pl.program_id(1)
    tv = w_ref.shape[0]

    @pl.when(v == 0)
    def _init():
        m_s[...] = jnp.full_like(m_s, -1e30)
        l_s[...] = jnp.zeros_like(l_s)
        t_s[...] = jnp.zeros_like(t_s)

    # (TV, TM) logits tile: bf16 operands, f32 accumulate on the MXU.
    logits = jnp.dot(w_ref[...], h_ref[...],
                     preferred_element_type=jnp.float32) + b_ref[...]

    # Online log-sum-exp over the vocab (sublane) axis.
    m_tile = jnp.max(logits, axis=0, keepdims=True)            # (1, TM)
    m_new = jnp.maximum(m_s[...], m_tile)
    alpha = jnp.exp(m_s[...] - m_new)                          # (1, TM)
    p = jnp.exp(logits - m_new)                                # (TV, TM) EUP
    l_s[...] = alpha * l_s[...] + jnp.sum(p, axis=0, keepdims=True)
    m_s[...] = m_new

    # Target-logit gather: the target id falls in exactly one vocab tile, so
    # the masked sum is zero elsewhere and "+=" accumulates it correctly.
    # (Padded vocab rows have ids >= V and never match a real target.)
    vocab_ids = lax.broadcasted_iota(jnp.int32, logits.shape, 0) + v * tv
    hit = vocab_ids == tgt_ref[0]                              # (TV, TM)
    t_s[...] += jnp.sum(jnp.where(hit, logits, 0.0), axis=0, keepdims=True)

    @pl.when(v == pl.num_programs(1) - 1)
    def _finalize():
        lse = m_s[...] + jnp.log(l_s[...])
        out_ref[0] = (t_s[...] - lse).astype(out_ref.dtype)    # (1, TM) store


def actor_forward(sequences, params, num_actions, attention_mask=None, *,
                  row_tile=128, vocab_tile=512,
                  compute_dtype=jnp.bfloat16, vmem_limit_mb=48):
    """Returns action log probs, shape [B, num_actions], like Actor.forward."""
    # TODO(synk): attention_mask is accepted for API parity but the synthetic
    # per-token LM (embed -> lm_head) has no attention layer to apply it to.
    del attention_mask

    embed = params["embed"]      # [V, H]
    w_out = params["w_out"]      # [H, V]
    b_out = params["b_out"]      # [1, V]

    B, S = sequences.shape
    V, H = embed.shape
    assert w_out.shape == (H, V) and b_out.shape == (1, V)
    assert 0 < num_actions <= S - 1
    assert row_tile % 128 == 0 and vocab_tile % 128 == 0

    # Only the last `num_actions` positions are returned, so only those rows
    # of the lm_head are computed: position p in [S-1-num_actions, S-2]
    # predicts token p+1.  (Exact here because the stand-in model is
    # per-token; a real causal LM would still only need these *hidden* rows
    # for the lm_head + log-softmax fusion.)
    ctx = sequences[:, S - 1 - num_actions:S - 1]               # [B, A]
    tgt = sequences[:, S - num_actions:].astype(jnp.int32)      # [B, A]

    # TODO(synk): the embedding gather could be fused into the kernel via a
    # pl.Element row-gather BlockSpec; kept in XLA since only B*A rows remain.
    hidden = embed[ctx].astype(compute_dtype)                   # [B, A, H]
    N = B * num_actions

    TM = row_tile
    TV = min(vocab_tile, _round_up(V, 128))
    N_pad = _round_up(N, TM)
    V_pad = _round_up(V, TV)
    R = N_pad // TM
    n_vocab_tiles = V_pad // TV

    # Transposed activations: positions on the lane axis (lane-dense output,
    # no in-kernel transposes).  Padded rows compute garbage that is sliced
    # off below.
    h_t = jnp.pad(hidden.reshape(N, H).T, ((0, 0), (0, N_pad - N)))  # [H, N_pad]
    tgt3 = jnp.pad(tgt.reshape(N), (0, N_pad - N)).reshape(R, 1, TM)

    # Vocab-major weight / bias; padded vocab rows get a large negative bias
    # so they contribute exp(...) == 0 to the log-sum-exp.
    w_vm = jnp.pad(w_out.T.astype(compute_dtype), ((0, V_pad - V), (0, 0)))
    b_col = jnp.pad(b_out.reshape(V, 1).astype(jnp.float32),
                    ((0, V_pad - V), (0, 0)), constant_values=-1e30)

    out3 = pl.pallas_call(
        _lm_head_logprob_kernel,
        out_shape=jax.ShapeDtypeStruct((R, 1, TM), jnp.float32),
        grid_spec=pltpu.PrefetchScalarGridSpec(
            num_scalar_prefetch=0,
            grid=(R, n_vocab_tiles),                    # vocab (reduction) last
            in_specs=[
                pl.BlockSpec((H, TM), lambda i, v: (0, i)),       # hidden (resident over v)
                pl.BlockSpec((TV, H), lambda i, v: (v, 0)),       # W tile (streamed)
                pl.BlockSpec((TV, 1), lambda i, v: (v, 0)),       # bias tile
                pl.BlockSpec((1, 1, TM), lambda i, v: (i, 0, 0)), # targets
            ],
            out_specs=pl.BlockSpec((1, 1, TM), lambda i, v: (i, 0, 0)),
            scratch_shapes=[
                pltpu.VMEM((1, TM), jnp.float32),   # running max
                pltpu.VMEM((1, TM), jnp.float32),   # running sum-exp
                pltpu.VMEM((1, TM), jnp.float32),   # target logit
            ],
        ),
        compiler_params=pltpu.CompilerParams(
            dimension_semantics=("parallel", "arbitrary"),
            # Sized so the streamed (TV,H) bf16 weight tile (double-buffered)
            # + (TV,TM) f32 logits fit comfortably on v7x's 64 MiB VMEM too;
            # raise on v5e/v6e if larger TV/TM tiles are requested.
            vmem_limit_bytes=vmem_limit_mb * 1024 * 1024,
        ),
    )(h_t, w_vm, b_col, tgt3)

    log_probs = out3.reshape(N_pad)[:N].reshape(B, num_actions)
    return log_probs


def _reference_forward(sequences, params, num_actions,
                       compute_dtype=jnp.bfloat16):
    """Pure-JAX reference matching Actor.forward (same bf16 matmul rounding)."""
    hidden = params["embed"][sequences].astype(compute_dtype)        # [B,S,H]
    logits = jnp.einsum("bsh,hv->bsv", hidden,
                        params["w_out"].astype(compute_dtype),
                        preferred_element_type=jnp.float32) + params["b_out"]
    lp = jax.nn.log_softmax(logits[:, :-1, :], axis=-1)
    tgt = sequences[:, 1:][..., None]
    gathered = jnp.take_along_axis(lp, tgt, axis=-1)[..., 0]
    return gathered[:, -num_actions:]


if __name__ == "__main__":
    def _run_case(B, S, H, V, num_actions, vocab_tile):
        key = jax.random.PRNGKey(0)
        k_emb, k_w, k_b, k_seq = jax.random.split(key, 4)
        params = {
            "embed": jax.random.normal(k_emb, (V, H), jnp.float32) * 0.1,
            "w_out": jax.random.normal(k_w, (H, V), jnp.float32) * 0.1,
            "b_out": jax.random.normal(k_b, (1, V), jnp.float32) * 0.01,
        }
        sequences = jax.random.randint(k_seq, (B, S), 0, V, dtype=jnp.int32)
        attention_mask = jnp.ones((B, S), jnp.int32)

        out = actor_forward(sequences, params, num_actions,
                            attention_mask=attention_mask,
                            vocab_tile=vocab_tile)
        out = jax.block_until_ready(out)

        ref = _reference_forward(sequences, params, num_actions)
        assert out.shape == (B, num_actions), out.shape
        np.testing.assert_allclose(np.asarray(out), np.asarray(ref),
                                   rtol=1e-4, atol=1e-4)

    # Case 1: small shapes; vocab is NOT a multiple of the vocab tile
    # (exercises vocab padding + multi-tile online log-sum-exp) and rows are
    # heavily padded up to one 128-row tile.
    _run_case(B=2, S=9, H=32, V=320, num_actions=4, vocab_tile=128)

    # Case 2: enough positions for >1 row tile (exercises the parallel row
    # axis and per-row-tile accumulator re-initialisation).
    _run_case(B=2, S=100, H=32, V=256, num_actions=96, vocab_tile=128)

    print("KERNEL_OK")
</pallas_src>

<mosaic_0001>
module attributes {stable_mosaic.version = 11 : i64} {
  func.func @_lm_head_logprob_kernel(%arg0: i32, %arg1: i32, %arg2: memref<32x128xbf16, #tpu.memory_space<vmem>>, %arg3: memref<128x32xbf16, #tpu.memory_space<vmem>>, %arg4: memref<128x1xf32, #tpu.memory_space<vmem>>, %arg5: memref<1x1x128xi32, #tpu.memory_space<vmem>>, %arg6: memref<1x1x128xf32, #tpu.memory_space<vmem>>, %arg7: memref<1x128xf32, #tpu.memory_space<vmem>>, %arg8: memref<1x128xf32, #tpu.memory_space<vmem>>, %arg9: memref<1x128xf32, #tpu.memory_space<vmem>>) attributes {dimension_semantics = [#tpu.dimension_semantics<parallel>, #tpu.dimension_semantics<arbitrary>], iteration_bounds = array<i64: 1, 3>, scalar_prefetch = 0 : i64, scratch_operands = 3 : i64, tpu.core_type = #tpu.core_type<tc>, window_params = [{transform_indices = @transform_0, window_bounds = array<i64: 32, 128>}, {transform_indices = @transform_1, window_bounds = array<i64: 128, 32>}, {transform_indices = @transform_2, window_bounds = array<i64: 128, 1>}, {transform_indices = @transform_3, window_bounds = array<i64: 1, 1, 128>}, {transform_indices = @transform_4, window_bounds = array<i64: 1, 1, 128>}]} {
    %c0_i32 = arith.constant 0 : i32
    %0 = arith.cmpi eq, %arg1, %c0_i32 : i32
    %1 = arith.extui %0 : i1 to i32
    %c0_i32_0 = arith.constant 0 : i32
    %2 = arith.cmpi ne, %1, %c0_i32_0 : i32
    scf.if %2 {
      %cst_28 = arith.constant -1.000000e+30 : f32
      %44 = vector.broadcast %cst_28 : f32 to vector<1x128xf32>
      %c0_29 = arith.constant 0 : index
      %c0_30 = arith.constant 0 : index
      %45 = vector.load %arg7[%c0_29, %c0_30] : memref<1x128xf32, #tpu.memory_space<vmem>>, vector<1x128xf32>
      tpu.vector_store %arg7[%c0_29, %c0_30], %44 {strides = array<i32>} : memref<1x128xf32, #tpu.memory_space<vmem>>, vector<1x128xf32>,
      %cst_31 = arith.constant 0.000000e+00 : f32
      %46 = vector.broadcast %cst_31 : f32 to vector<1x128xf32>
      %c0_32 = arith.constant 0 : index
      %c0_33 = arith.constant 0 : index
      %47 = vector.load %arg8[%c0_32, %c0_33] : memref<1x128xf32, #tpu.memory_space<vmem>>, vector<1x128xf32>
      tpu.vector_store %arg8[%c0_32, %c0_33], %46 {strides = array<i32>} : memref<1x128xf32, #tpu.memory_space<vmem>>, vector<1x128xf32>,
      %cst_34 = arith.constant 0.000000e+00 : f32
      %48 = vector.broadcast %cst_34 : f32 to vector<1x128xf32>
      %c0_35 = arith.constant 0 : index
      %c0_36 = arith.constant 0 : index
      %49 = vector.load %arg9[%c0_35, %c0_36] : memref<1x128xf32, #tpu.memory_space<vmem>>, vector<1x128xf32>
      tpu.vector_store %arg9[%c0_35, %c0_36], %48 {strides = array<i32>} : memref<1x128xf32, #tpu.memory_space<vmem>>, vector<1x128xf32>,
    } else {
    }
    %c0 = arith.constant 0 : index
    %c0_1 = arith.constant 0 : index
    %3 = vector.load %arg3[%c0, %c0_1] : memref<128x32xbf16, #tpu.memory_space<vmem>>, vector<128x32xbf16>
    %c0_2 = arith.constant 0 : index
    %c0_3 = arith.constant 0 : index
    %4 = vector.load %arg2[%c0_2, %c0_3] : memref<32x128xbf16, #tpu.memory_space<vmem>>, vector<32x128xbf16>
    %cst = arith.constant dense<0.000000e+00> : vector<128x128xf32>
    %5 = tpu.matmul %3, %4, %cst {dimension_numbers = #tpu.dot_dimension_numbers<[1], [0], [0], [1], [0, 0, 1, 1], [], []>} : vector<128x32xbf16>, vector<32x128xbf16>, vector<128x128xf32> -> vector<128x128xf32>
    %c0_4 = arith.constant 0 : index
    %c0_5 = arith.constant 0 : index
    %6 = vector.load %arg4[%c0_4, %c0_5] : memref<128x1xf32, #tpu.memory_space<vmem>>, vector<128x1xf32>
    %7 = vector.broadcast %6 : vector<128x1xf32> to vector<128x128xf32>
    %8 = arith.addf %5, %7 : vector<128x128xf32>
    %cst_6 = arith.constant dense<0xFF800000> : vector<128xf32>
    %9 = vector.multi_reduction <maximumf>, %8, %cst_6 [0] : vector<128x128xf32> to vector<128xf32>
    %10 = vector.shape_cast %9 : vector<128xf32> to vector<1x128xf32>
    %c0_7 = arith.constant 0 : index
    %c0_8 = arith.constant 0 : index
    %11 = vector.load %arg7[%c0_7, %c0_8] : memref<1x128xf32, #tpu.memory_space<vmem>>, vector<1x128xf32>
    %12 = arith.maximumf %11, %10 : vector<1x128xf32>
    %c0_9 = arith.constant 0 : index
    %c0_10 = arith.constant 0 : index
    %13 = vector.load %arg7[%c0_9, %c0_10] : memref<1x128xf32, #tpu.memory_space<vmem>>, vector<1x128xf32>
    %14 = arith.subf %13, %12 : vector<1x128xf32>
    %15 = math.exp %14 : vector<1x128xf32>
    %16 = vector.broadcast %12 : vector<1x128xf32> to vector<128x128xf32>
    %17 = arith.subf %8, %16 : vector<128x128xf32>
    %18 = math.exp %17 : vector<128x128xf32>
    %c0_11 = arith.constant 0 : index
    %c0_12 = arith.constant 0 : index
    %19 = vector.load %arg8[%c0_11, %c0_12] : memref<1x128xf32, #tpu.memory_space<vmem>>, vector<1x128xf32>
    %20 = arith.mulf %15, %19 : vector<1x128xf32>
    %cst_13 = arith.constant dense<0.000000e+00> : vector<128xf32>
    %21 = vector.multi_reduction <add>, %18, %cst_13 [0] : vector<128x128xf32> to vector<128xf32>
    %22 = vector.shape_cast %21 : vector<128xf32> to vector<1x128xf32>
    %23 = arith.addf %20, %22 : vector<1x128xf32>
    %c0_14 = arith.constant 0 : index
    %c0_15 = arith.constant 0 : index
    %24 = vector.load %arg8[%c0_14, %c0_15] : memref<1x128xf32, #tpu.memory_space<vmem>>, vector<1x128xf32>
    tpu.vector_store %arg8[%c0_14, %c0_15], %23 {strides = array<i32>} : memref<1x128xf32, #tpu.memory_space<vmem>>, vector<1x128xf32>,
    %c0_16 = arith.constant 0 : index
    %c0_17 = arith.constant 0 : index
    %25 = vector.load %arg7[%c0_16, %c0_17] : memref<1x128xf32, #tpu.memory_space<vmem>>, vector<1x128xf32>
    tpu.vector_store %arg7[%c0_16, %c0_17], %12 {strides = array<i32>} : memref<1x128xf32, #tpu.memory_space<vmem>>, vector<1x128xf32>,
    %26 = tpu.iota {dimensions = array<i32: 0>} : vector<128x128xi32>
    %c128_i32 = arith.constant 128 : i32
    %27 = arith.muli %arg1, %c128_i32 : i32
    %28 = vector.broadcast %27 : i32 to vector<128x128xi32>
    %29 = arith.addi %26, %28 : vector<128x128xi32>
    %c0_18 = arith.constant 0 : index
    %c0_19 = arith.constant 0 : index
    %c0_20 = arith.constant 0 : index
    %30 = vector.load %arg5[%c0_18, %c0_19, %c0_20] : memref<1x1x128xi32, #tpu.memory_space<vmem>>, vector<1x1x128xi32>
    %31 = vector.shape_cast %30 : vector<1x1x128xi32> to vector<1x128xi32>
    %32 = vector.broadcast %31 : vector<1x128xi32> to vector<128x128xi32>
    %33 = arith.cmpi eq, %29, %32 : vector<128x128xi32>
    %c0_21 = arith.constant 0 : index
    %c0_22 = arith.constant 0 : index
    %34 = vector.load %arg9[%c0_21, %c0_22] : memref<1x128xf32, #tpu.memory_space<vmem>>, vector<1x128xf32>
    %cst_23 = arith.constant 0.000000e+00 : f32
    %35 = vector.broadcast %cst_23 : f32 to vector<128x128xf32>
    %36 = arith.select %33, %8, %35 : vector<128x128xi1>, vector<128x128xf32>
    %cst_24 = arith.constant dense<0.000000e+00> : vector<128xf32>
    %37 = vector.multi_reduction <add>, %36, %cst_24 [0] : vector<128x128xf32> to vector<128xf32>
    %38 = vector.shape_cast %37 : vector<128xf32> to vector<1x128xf32>
    %39 = arith.addf %34, %38 : vector<1x128xf32>
    %c0_25 = arith.constant 0 : index
    %c0_26 = arith.constant 0 : index
    %40 = vector.load %arg9[%c0_25, %c0_26] : memref<1x128xf32, #tpu.memory_space<vmem>>, vector<1x128xf32>
    tpu.vector_store %arg9[%c0_25, %c0_26], %39 {strides = array<i32>} : memref<1x128xf32, #tpu.memory_space<vmem>>, vector<1x128xf32>,
    %c2_i32 = arith.constant 2 : i32
    %41 = arith.cmpi eq, %arg1, %c2_i32 : i32
    %42 = arith.extui %41 : i1 to i32
    %c0_i32_27 = arith.constant 0 : i32
    %43 = arith.cmpi ne, %42, %c0_i32_27 : i32
    scf.if %43 {
      %c0_28 = arith.constant 0 : index
      %c0_29 = arith.constant 0 : index
      %44 = vector.load %arg7[%c0_28, %c0_29] : memref<1x128xf32, #tpu.memory_space<vmem>>, vector<1x128xf32>
      %c0_30 = arith.constant 0 : index
      %c0_31 = arith.constant 0 : index
      %45 = vector.load %arg8[%c0_30, %c0_31] : memref<1x128xf32, #tpu.memory_space<vmem>>, vector<1x128xf32>
      %46 = math.log %45 : vector<1x128xf32>
      %47 = arith.addf %44, %46 : vector<1x128xf32>
      %c0_32 = arith.constant 0 : index
      %c0_33 = arith.constant 0 : index
      %48 = vector.load %arg9[%c0_32, %c0_33] : memref<1x128xf32, #tpu.memory_space<vmem>>, vector<1x128xf32>
      %49 = arith.subf %48, %47 : vector<1x128xf32>
      %c0_34 = arith.constant 0 : index
      %c0_35 = arith.constant 0 : index
      %c0_36 = arith.constant 0 : index
      %50 = vector.load %arg6[%c0_34, %c0_35, %c0_36] : memref<1x1x128xf32, #tpu.memory_space<vmem>>, vector<1x1x128xf32>
      %51 = vector.shape_cast %50 : vector<1x1x128xf32> to vector<1x128xf32>
      %52 = vector.shape_cast %49 : vector<1x128xf32> to vector<1x1x128xf32>
      tpu.vector_store %arg6[%c0_34, %c0_35, %c0_36], %52 {strides = array<i32>} : memref<1x1x128xf32, #tpu.memory_space<vmem>>, vector<1x1x128xf32>,
    } else {
    }
    return
  }
  func.func @transform_0(%arg0: i32, %arg1: i32) -> (i32, i32) {
    %c0_i32 = arith.constant 0 : i32
    %c0_i32_0 = arith.constant 0 : i32
    return %c0_i32, %arg0 : i32, i32
  }
  func.func @transform_1(%arg0: i32, %arg1: i32) -> (i32, i32) {
    %c0_i32 = arith.constant 0 : i32
    %c0_i32_0 = arith.constant 0 : i32
    return %arg1, %c0_i32 : i32, i32
  }
  func.func @transform_2(%arg0: i32, %arg1: i32) -> (i32, i32) {
    %c0_i32 = arith.constant 0 : i32
    %c0_i32_0 = arith.constant 0 : i32
    return %arg1, %c0_i32 : i32, i32
  }
  func.func @transform_3(%arg0: i32, %arg1: i32) -> (i32, i32, i32) {
    %c0_i32 = arith.constant 0 : i32
    %c0_i32_0 = arith.constant 0 : i32
    %c0_i32_1 = arith.constant 0 : i32
    return %arg0, %c0_i32, %c0_i32_0 : i32, i32, i32
  }
  func.func @transform_4(%arg0: i32, %arg1: i32) -> (i32, i32, i32) {
    %c0_i32 = arith.constant 0 : i32
    %c0_i32_0 = arith.constant 0 : i32
    %c0_i32_1 = arith.constant 0 : i32
    return %arg0, %c0_i32, %c0_i32_0 : i32, i32, i32
  }
}

</mosaic_0001>

<bundles_post_ra>
// kernel: tpu_custom_call.1
= control target key start
LH: loop header
LB: loop body
LE: loop exit
PB: predicated region body
PF: predicated region fallthrough
CT: control target
= control target key end

     0   :  { %9 = vsyncpa [#allocation6], 0  ;;  %s1101_s15 = smov 0   ;;  %s1103_s16 = smov 0   ;;  %s1402_s0 = inlined_call_operand.vmem [shape: bf16[32,128], index: 0, kind: input, shape index: {}]   ;;  %s1403_s1 = inlined_call_operand.vmem [shape: bf16[384,32], index: 1, kind: input, shape index: {}]   ;;  %s1404_s2 = inlined_call_operand.vmem [shape: f32[384,1], index: 2, kind: input, shape index: {}]   ;;  %s1405_s3 = inlined_call_operand.vmem [shape: s32[1,1,128], index: 3, kind: input, shape index: {}]   ;;  %s1406_s4 = inlined_call_operand.hbm [shape: f32[1,1,128], index: 4, kind: output, shape index: {}]  }
   0x1   :  { %s1105_s17 = smov 0  }
   0x2 LB: > { %s866_s18 = sadd.s32 4294967295, %s1070_s17   ;;  %s24_s19 = sadd.s32 1, %s1066_s16  ;;  %s1070_s17 = sphi %s1105_s17, %s15_s17   ;;  %s1066_s16 = sphi %s1103_s16, %s1409_s16   ;;  %s1062_s15 = sphi %s1101_s15, %s1408_s15  }
   0x3   : > { %p25_p0 = scmp.ge.s32.totalorder %s24_s19, 3  ;;  %p871_p1 = scmp.ge.s32.totalorder %s1070_s17, 1 }
   0x4   : > { %p204_p2 = scmp.lt.s32.totalorder %s1070_s17, 4 }
   0x5   : > { %s1411_s19 = smov (%p25_p0, %s24_s19), 0 }
   0x6   : > { %p205_p3 = pnand %p871_p1, %p204_p2 }
   0x7   : > { %s872_s20 = sshll.u32 (!%p205_p3), %s1062_s15, 4  ;;  %p876_p5 = scmp.ne.s32.totalorder (!%p205_p3), %s1062_s15, 0 }
   0x8   : > { %208 = sbr.rel (%p205_p3) target bundleno = 395 (0x18b), region = 36  ;;  %p242_p4 = scmp.lt.s32.totalorder (!%p205_p3), %s872_s20, 47 }
   0xf   : > { %s1413_s20 = smov (!%p242_p4, %s872_s20), 47  ;;  %260 = sbr.rel (%p876_p5) target bundleno = 22 (0x16), region = 40 }
  0x10   : > { %s873_s21 = sshll.u32 %s1413_s20, 2  ;;  %s875_s22 = sshll.u32 %s1413_s20, 3  ;;  %v1072_v0 = vmov (!%p876_p5), -1e+30   ;;  %v1073_v1 = vmov (!%p876_p5), 0.0  }
  0x11   : > { %s1126_s25 = scalar_lea.vmem %s1403_s1, %s873_s21  ;;  %s1131_s28 = scalar_lea.vmem %s1404_s2, %s875_s22  ;;  %261 = vst [vmem:[#allocation2] sm:$0x1] (!%p876_p5), %v1072_v0  ;;  %262 = vst [vmem:[#allocation3] sm:$0x1] (!%p876_p5), %v1073_v1 }
  0x12   : > { %263 = vst [vmem:[#allocation4] sm:$0x1] (!%p876_p5), %v1073_v1 }
  0x16 PF: > { %v972_v2 = vld [vmem:[%s1402_s0] sm:$0xff]   ;;  %v973_v3 = vld [vmem:[%s1402_s0 + $0x8] sm:$0xff]   ;;  %vm432_vm0 = vcmask 261120   ;;  %v978_v8 = vld [vmem:[%s1126_s25 + $0x10] sm:$0xff]   ;;  %v1074_v9 = vmov 0   ;;  %v581_v37 = vlaneseq  ;;  %s895_s7 = sshll.u32 %s1062_s15, 7 }
  0x17   : > { %912 = vmatprep.subr.bf16.mxu0 %v972_v2  ;;  %932 = vmatprep.subr.bf16.mxu1 %v972_v2  ;;  %v974_v4 = vld [vmem:[%s1126_s25] sm:$0xff]   ;;  %v976_v6 = vld [vmem:[%s1126_s25 + $0x8] sm:$0xff]   ;;  %v979_v10 = vld [vmem:[%s1126_s25 + $0x30] sm:$0xff]   ;;  %v1186_v42 = vstv %s895_s7  ;;  %p897_p6 = scmp.ne.s32.totalorder %s1062_s15, 2 }
  0x18   : > { %913 = vmatpush3.bf16.msra.mxu0 %v972_v2  ;;  %934 = vmatpush3.bf16.msra.mxu1 %v972_v2  ;;  %v975_v5 = vld [vmem:[%s1126_s25 + $0x20] sm:$0xff]   ;;  %v977_v7 = vld [vmem:[%s1126_s25 + $0x28] sm:$0xff]   ;;  %v286_v11 = vld [vmem:[%s1131_s28 + $0x10] sm:$0xff]  ;;  %v1182_v40 = vshrl.u32 %v581_v37, 7 }
  0x19   : > { %914 = vmatprep.subr.bf16.mxu0 %v973_v3  ;;  %933 = vmatprep.subr.bf16.mxu1 %v973_v3  ;;  %v284_v12 = vld [vmem:[%s1131_s28] sm:$0xff]  ;;  %v287_v13 = vld [vmem:[%s1131_s28 + $0x18] sm:$0xff]  ;;  %v285_v14 = vld [vmem:[%s1131_s28 + $0x8] sm:$0xff] }
  0x1a   : > { %916 = vmatprep.mubr.msk.bf16.mxu0 %vm432_vm0, %v974_v4  ;;  %924 = vmatprep.mubr.msk.bf16.mxu1 %vm432_vm0, %v975_v5  ;;  %v980_v15 = vld [vmem:[%s1126_s25 + $0x18] sm:$0xff]   ;;  %v289_v17 = vld [vmem:[%s1131_s28 + $0x28] sm:$0xff]  ;;  %v288_v18 = vld [vmem:[%s1131_s28 + $0x20] sm:$0xff]  ;;  %v662_v41 = vadd.s32 8, %v1182_v40  ;;  %v663_v43 = vadd.s32 16, %v1182_v40  ;;  %v679_v46 = vadd.s32 %v1186_v42, %v1182_v40  ;;  %v664_v47 = vadd.s32 24, %v1182_v40 }
  0x1b   : > { %971 = vset.pattern.permute.xlu1 %v1074_v9  ;;  %970 = vset.pattern.permute.xlu0 %v1074_v9  ;;  %v981_v16 = vld [vmem:[%s1126_s25 + $0x38] sm:$0xff]   ;;  %v290_v20 = vld [vmem:[%s1131_s28 + $0x30] sm:$0xff]  ;;  %v293_v21 = vld [vmem:[%s1131_s28 + $0x48] sm:$0xff]  ;;  %v667_v55 = vadd.s32 48, %v1182_v40  ;;  %v665_v56 = vadd.s32 32, %v1182_v40  ;;  %v668_v60 = vadd.s32 56, %v1182_v40 }
  0x1c   : > { %915 = vmatpush3.bf16.msra.mxu0 %v973_v3  ;;  %935 = vmatpush3.bf16.msra.mxu1 %v973_v3  ;;  %v291_v19 = vld [vmem:[%s1131_s28 + $0x38] sm:$0xff]  ;;  %v292_v22 = vld [vmem:[%s1131_s28 + $0x40] sm:$0xff]  ;;  %v294_v24 = vld [vmem:[%s1131_s28 + $0x50] sm:$0xff]  ;;  %v680_v48 = vadd.s32 %v1186_v42, %v662_v41  ;;  %v681_v52 = vadd.s32 %v1186_v42, %v663_v43  ;;  %v682_v61 = vadd.s32 %v1186_v42, %v664_v47  ;;  %v666_v0 = vadd.s32 40, %v1182_v40 }
  0x1d   : > { %312 = vperm.xlu1 %971, %v286_v11   ;;  %302 = vperm.xlu0 %970, %v284_v12   ;;  %v295_v23 = vld [vmem:[%s1131_s28 + $0x58] sm:$0xff]  ;;  %v297_v25 = vld [vmem:[%s1131_s28 + $0x68] sm:$0xff]  ;;  %v296_v26 = vld [vmem:[%s1131_s28 + $0x60] sm:$0xff]  ;;  %v669_v2 = vadd.s32 64, %v1182_v40  ;;  %v670_v4 = vadd.s32 72, %v1182_v40  ;;  %v685_v5 = vadd.s32 %v1186_v42, %v667_v55  ;;  %v686_v11 = vadd.s32 %v1186_v42, %v668_v60 }
  0x1e   : > { %v299_v27 = vld [vmem:[%s1131_s28 + $0x78] sm:$0xff]  ;;  %v298_v28 = vld [vmem:[%s1131_s28 + $0x70] sm:$0xff]  ;;  %v1198_v50 = vld [vmem:[%s1405_s3] ss:$0 sm:$0xff] }
  0x1f   : > { %917 = vmatmul.mubr.msk.bf16.vlgmr.msra.gmra.mrb[0].mxu0 %vm432_vm0, %v976_v6  ;;  %925 = vmatmul.mubr.msk.bf16.vlgmr.msra.gmra.mrb[0].mxu1 %vm432_vm0, %v977_v7  ;;  %vm700_vm1 = vcmp.eq.s32.totalorder %v679_v46, %v1198_v50  ;;  %vm701_vm2 = vcmp.eq.s32.totalorder %v680_v48, %v1198_v50  ;;  %vm702_vm3 = vcmp.eq.s32.totalorder %v681_v52, %v1198_v50 }
  0x20   : > { %920 = vmatprep.mubr.msk.bf16.mxu0 %vm432_vm0, %v978_v8  ;;  %928 = vmatprep.mubr.msk.bf16.mxu1 %vm432_vm0, %v979_v10  ;;  %v683_v6 = vadd.s32 %v1186_v42, %v665_v56  ;;  %vm703_vm4 = vcmp.eq.s32.totalorder %v682_v61, %v1198_v50  ;;  %vm706_vm6 = vcmp.eq.s32.totalorder %v685_v5, %v1198_v50 }
  0x21   : > { %317 = vperm.xlu1 %971, %v287_v13   ;;  %307 = vperm.xlu0 %970, %v285_v14   ;;  %v684_v14 = vadd.s32 %v1186_v42, %v666_v0  ;;  %vm707_vm7 = vcmp.eq.s32.totalorder %v686_v11, %v1198_v50 }
  0x22   : > { %vm704_vm5 = vcmp.eq.s32.totalorder %v683_v6, %v1198_v50 }
  0x23   : > { %vm705_vm8 = vcmp.eq.s32.totalorder %v684_v14, %v1198_v50 }
  0x25   : > { %327 = vperm.xlu1 %971, %v289_v17   ;;  %322 = vperm.xlu0 %970, %v288_v18   ;;  %v687_v17 = vadd.s32 %v1186_v42, %v669_v2  ;;  %v672_v18 = vadd.s32 88, %v1182_v40  ;;  %v673_v2 = vadd.s32 96, %v1182_v40 }
  0x27   : > { %921 = vmatmul.mubr.msk.bf16.gmra.mrb[4].mxu0 %vm432_vm0, %v980_v15  ;;  %929 = vmatmul.mubr.msk.bf16.gmra.mrb[4].mxu1 %vm432_vm0, %v981_v16  ;;  %v671_v16 = vadd.s32 80, %v1182_v40  ;;  %vm708_vm9 = vcmp.eq.s32.totalorder %v687_v17, %v1198_v50  ;;  %v691_v17 = vadd.s32 %v1186_v42, %v673_v2 }
  0x29   : > { %337 = vperm.xlu1 %971, %v291_v19   ;;  %332 = vperm.xlu0 %970, %v290_v20   ;;  %vm712_vm13 = vcmp.eq.s32.totalorder %v691_v17, %v1198_v50 }
  0x2d   : > { %347 = vperm.xlu1 %971, %v293_v21   ;;  %342 = vperm.xlu0 %970, %v292_v22   ;;  %v688_v22 = vadd.s32 %v1186_v42, %v670_v4 }
  0x2f   : > { %vm709_vm10 = vcmp.eq.s32.totalorder %v688_v22, %v1198_v50 }
  0x31   : > { %357 = vperm.xlu1 %971, %v295_v23   ;;  %352 = vperm.xlu0 %970, %v294_v24  }
  0x35   : > { %367 = vperm.xlu1 %971, %v297_v25   ;;  %362 = vperm.xlu0 %970, %v296_v26  }
  0x39   : > { %377 = vperm.xlu1 %971, %v299_v27   ;;  %372 = vperm.xlu0 %970, %v298_v28  }
  0x9c   : > { %v313_v29 = vpop.permute.xlu1 %312  ;;  %v303_v30 = vpop.permute.xlu0 %302 }
  0xa0   : > { %v318_v31 = vpop.permute.xlu1 %317  ;;  %v308_v32 = vpop.permute.xlu0 %307 }
  0xa4   : > { %v1172_v33 = vpop.permute.xlu1 %327  ;;  %v1174_v34 = vpop.permute.xlu0 %322 }
  0xa8   : > { %v1176_v35 = vpop.permute.xlu1 %337  ;;  %v333_v36 = vpop.permute.xlu0 %332 }
  0xac   : > { %v1178_v38 = vpop.permute.xlu1 %347  ;;  %v1180_v39 = vpop.permute.xlu0 %342 }
  0xb0   : > { %v1189_v44 = vpop.permute.xlu1 %357  ;;  %v353_v45 = vpop.permute.xlu0 %352 }
  0xb4   : > { %v363_v7 = vpop.permute.xlu0 %362  ;;  %v368_v12 = vpop.permute.xlu1 %367 }
  0xb8   : > { %v373_v41 = vpop.permute.xlu0 %372 }
  0xf2   : > { %v918_v49 = vpop.f32.mrb[0].mxu0  ;;  %v926_v51 = vpop.f32.mrb[0].mxu1 }
  0xf3   : > { %v491_v53 = vpop.f32.mrb[1].mxu0  ;;  %v523_v54 = vpop.f32.mrb[1].mxu1  ;;  %v1210_v1 = vadd.f32 %v918_v49, %v313_v29 }
  0xf4   : > { %v1203_v57 = vadd.f32 %v491_v53, %v303_v30  ;;  %v919_v58 = vpop.f32.mrb[2].mxu0  ;;  %v927_v59 = vpop.f32.mrb[2].mxu1  ;;  %v1240_v30 = vadd.f32 %v926_v51, %v353_v45  ;;  %v1246_v43 = vadd.f32 %v523_v54, %v1180_v39 }
  0xf5   : > { %v494_v62 = vpop.f32.mrb[3].mxu0  ;;  %v526_v63 = vpop.f32.mrb[3].mxu1  ;;  %v1220_v9 = vadd.f32 %v919_v58, %v318_v31  ;;  %v719_v15 = vsel %vm702_vm3, %v1210_v1, 0.0  ;;  %v1263_v39 = vadd.f32 %v927_v59, %v1189_v44 }
  0xf6   : > { %v1213_v3 = vadd.f32 %v494_v62, %v308_v32  ;;  %v717_v8 = vsel %vm700_vm1, %v1203_v57, 0.0  ;;  %v1271_v55 = vadd.f32 %v526_v63, %v1178_v38  ;;  %v689_v62 = vadd.s32 %v1186_v42, %v671_v16 }
  0xf7   : > { %v720_v26 = vsel %vm703_vm4, %v1220_v9, 0.0  ;;  %v725_v14 = vsel %vm708_vm9, %v1246_v43, 0.0  ;;  %v675_v16 = vadd.s32 112, %v1182_v40 }
  0xf8   : > { %v718_v10 = vsel %vm701_vm2, %v1213_v3, 0.0  ;;  %vm710_vm11 = vcmp.eq.s32.totalorder %v689_v62, %v1198_v50  ;;  %v726_v11 = vsel %vm709_vm10, %v1271_v55, 0.0 }
  0xf9   : > { %v733_v13 = vadd.f32 %v718_v10, %v717_v8 }
  0xfa   : > { %v922_v19 = vpop.f32.mrb[4].mxu0  ;;  %v930_v20 = vpop.f32.mrb[4].mxu1 }
  0xfb   : > { %v734_v21 = vadd.f32 %v733_v13, %v719_v15  ;;  %v1231_v23 = vadd.f32 %v922_v19, %v333_v36  ;;  %v507_v24 = vpop.f32.mrb[5].mxu0  ;;  %v539_v25 = vpop.f32.mrb[5].mxu1  ;;  %v1256_v47 = vadd.f32 %v930_v20, %v373_v41  ;;  %v674_v13 = vadd.s32 104, %v1182_v40 }
  0xfc   : > { %v1237_v27 = vadd.f32 %v507_v24, %v1174_v34  ;;  %v923_v28 = vpop.f32.mrb[6].mxu0  ;;  %v931_v29 = vpop.f32.mrb[6].mxu1  ;;  %v1265_v52 = vadd.f32 %v539_v25, %v363_v7  ;;  %v690_v7 = vadd.s32 %v1186_v42, %v672_v18  ;;  %v676_v20 = vadd.s32 120, %v1182_v40 }
  0xfd   : > { %v556_v31 = vmax.f32 %v1210_v1, %v1231_v23  ;;  %v735_v32 = vadd.f32 %v734_v21, %v720_v26  ;;  %v510_v36 = vpop.f32.mrb[7].mxu0  ;;  %v542_v37 = vpop.f32.mrb[7].mxu1  ;;  %v1254_v46 = vadd.f32 %v923_v28, %v1176_v35  ;;  %v723_v38 = vsel %vm706_vm6, %v1231_v23, 0.0 }
  0xfe   : > { %v554_v34 = vmax.f32 %v1203_v57, %v1237_v27  ;;  %v721_v45 = vsel %vm704_vm5, %v1237_v27, 0.0  ;;  %v1260_v51 = vadd.f32 %v510_v36, %v1172_v33  ;;  %v378_v35 = vpop.permute.xlu1 %377  ;;  %v1287_v63 = vadd.f32 %v542_v37, %v368_v12 }
  0xff   : > { %v560_v48 = vmax.f32 %v556_v31, %v1240_v30  ;;  %v736_v49 = vadd.f32 %v735_v32, %v721_v45  ;;  %v557_v54 = vmax.f32 %v1220_v9, %v1254_v46  ;;  %v1280_v59 = vadd.f32 %v931_v29, %v378_v35  ;;  %v1319_v35 = vld [vmem:[#allocation2] sm:$0x1] }
 0x100   : > { %v558_v53 = vmax.f32 %v554_v34, %v1246_v43  ;;  %v555_v33 = vmax.f32 %v1213_v3, %v1260_v51  ;;  %v722_v44 = vsel %vm705_vm8, %v1260_v51, 0.0  ;;  %v724_v8 = vsel %vm707_vm7, %v1254_v46, 0.0 }
 0x101   : > { %v564_v56 = vmax.f32 %v560_v48, %v1256_v47  ;;  %v561_v60 = vmax.f32 %v557_v54, %v1263_v39  ;;  %v737_v61 = vadd.f32 %v736_v49, %v722_v44  ;;  %vm711_vm12 = vcmp.eq.s32.totalorder %v690_v7, %v1198_v50 }
 0x102   : > { %v562_v58 = vmax.f32 %v558_v53, %v1265_v52  ;;  %v559_v0 = vmax.f32 %v555_v33, %v1271_v55  ;;  %v692_v21 = vadd.s32 %v1186_v42, %v674_v13  ;;  %v727_v24 = vsel %vm710_vm11, %v1240_v30, 0.0 }
 0x103   : > { %v565_v4 = vmax.f32 %v561_v60, %v1280_v59  ;;  %v738_v6 = vadd.f32 %v737_v61, %v723_v38  ;;  %v693_v26 = vadd.s32 %v1186_v42, %v675_v16  ;;  %v728_v29 = vsel %vm711_vm12, %v1263_v39, 0.0 }
 0x104   : > { %v563_v5 = vmax.f32 %v559_v0, %v1287_v63  ;;  %v694_v32 = vadd.s32 %v1186_v42, %v676_v20  ;;  %vm713_vm14 = vcmp.eq.s32.totalorder %v692_v21, %v1198_v50  ;;  %v729_v37 = vsel %vm712_vm13, %v1265_v52, 0.0 }
 0x105   : > { %v567_v10 = vmax.f32 %v564_v56, %v565_v4  ;;  %v739_v12 = vadd.f32 %v738_v6, %v724_v8  ;;  %vm714_vm15 = vcmp.eq.s32.totalorder %v693_v26, %v1198_v50  ;;  %v730_v48 = vsel %vm713_vm14, %v1287_v63, 0.0 }
 0x106   : > { %v566_v15 = vmax.f32 %v562_v58, %v563_v5  ;;  %vm715_vm0 = vcmp.eq.s32.totalorder %v694_v32, %v1198_v50  ;;  %v731_v53 = vsel %vm714_vm15, %v1256_v47, 0.0  ;;  %v583_v44 = vsub.s32 0, %v1182_v40 }
 0x107   : > { %v740_v18 = vadd.f32 %v739_v12, %v725_v14  ;;  %v732_v56 = vsel %vm715_vm0, %v1280_v59, 0.0 }
 0x108   : > { %v568_v19 = vmax.f32 %v566_v15, %v567_v10 }
 0x109   : > { %v741_v22 = vadd.f32 %v740_v18, %v726_v11 }
 0x10a   : > { %v569_v25 = vrot.slane %v568_v19, 4 }
 0x10b   : > { %v742_v28 = vadd.f32 %v741_v22, %v727_v24 }
 0x10c   : > { %v570_v31 = vmax.f32 %v568_v19, %v569_v25 }
 0x10d   : > { %v743_v36 = vadd.f32 %v742_v28, %v728_v29 }
 0x10e   : > { %v571_v41 = vrot.slane %v570_v31, 2 }
 0x10f   : > { %v744_v34 = vadd.f32 %v743_v36, %v729_v37 }
 0x110   : > { %v572_v45 = vmax.f32 %v570_v31, %v571_v41 }
 0x111   : > { %v745_v49 = vadd.f32 %v744_v34, %v730_v48 }
 0x112   : > { %v573_v54 = vrot.slane %v572_v45, 1 }
 0x113   : > { %v746_v42 = vadd.f32 %v745_v49, %v731_v53 }
 0x114   : > { %v574_v33 = vmax.f32 %v572_v45, %v573_v54 }
 0x115   : > { %v747_v58 = vadd.f32 %v746_v42, %v732_v56 }
 0x116   : > { %v1324_v60 = vmax.f32 %v1319_v35, %v574_v33 }
 0x117   : > { %v748_v0 = vrot.slane %v747_v58, 4 }
 0x118   : > { %v1327_v61 = vrot.slane %v1324_v60, %v583_v44  ;;  %659 = vst [vmem:[#allocation2] sm:$0x1] %v1324_v60 }
 0x119   : > { %v749_v5 = vadd.f32 %v748_v0, %v747_v58 }
 0x11a   : > { %v586_v50 = vsub.f32 %v1203_v57, %v1327_v61  ;;  %v587_v62 = vsub.f32 %v1213_v3, %v1327_v61  ;;  %v588_v38 = vsub.f32 %v1210_v1, %v1327_v61  ;;  %v589_v40 = vsub.f32 %v1220_v9, %v1327_v61 }
 0x11b   : > { %v590_v2 = vsub.f32 %v1237_v27, %v1327_v61  ;;  %v591_v4 = vsub.f32 %v1260_v51, %v1327_v61  ;;  %v592_v6 = vsub.f32 %v1231_v23, %v1327_v61  ;;  %v593_v57 = vsub.f32 %v1254_v46, %v1327_v61 }
 0x11c   : > { %v594_v3 = vsub.f32 %v1246_v43, %v1327_v61  ;;  %v595_v1 = vsub.f32 %v1271_v55, %v1327_v61  ;;  %v596_v9 = vsub.f32 %v1240_v30, %v1327_v61  ;;  %v597_v27 = vsub.f32 %v1263_v39, %v1327_v61 }
 0x11d   : > { %v598_v51 = vsub.f32 %v1265_v52, %v1327_v61  ;;  %v599_v23 = vsub.f32 %v1287_v63, %v1327_v61  ;;  %v600_v46 = vsub.f32 %v1256_v47, %v1327_v61  ;;  %v601_v43 = vsub.f32 %v1280_v59, %v1327_v61  ;;  %v716_v47 = vld [vmem:[#allocation4] sm:$0x1] }
 0x11e   : > { %v602_v7 = vmul.f32 1.442695, %v586_v50  ;;  %v604_v55 = vmul.f32 1.442695, %v587_v62  ;;  %v606_v8 = vmul.f32 1.442695, %v588_v38  ;;  %v577_v50 = vsub.f32 %v1319_v35, %v1324_v60 }
 0x11f   : > { %v608_v30 = vmul.f32 1.442695, %v589_v40  ;;  %v610_v39 = vmul.f32 1.442695, %v590_v2  ;;  %v750_v10 = vrot.slane %v749_v5, 2 }
 0x120   : > { %982 = vpow2.f32 %v602_v7  ;;  %v612_v52 = vmul.f32 1.442695, %v591_v4  ;;  %v614_v63 = vmul.f32 1.442695, %v592_v6  ;;  %v616_v14 = vmul.f32 1.442695, %v593_v57 }
 0x121   : > { %984 = vpow2.f32 %v604_v55  ;;  %v751_v12 = vadd.f32 %v750_v10, %v749_v5  ;;  %v618_v17 = vmul.f32 1.442695, %v594_v3  ;;  %v620_v20 = vmul.f32 1.442695, %v595_v1 }
 0x122   : > { %986 = vpow2.f32 %v606_v8  ;;  %v622_v24 = vmul.f32 1.442695, %v596_v9  ;;  %v624_v28 = vmul.f32 1.442695, %v597_v27  ;;  %v626_v32 = vmul.f32 1.442695, %v598_v51 }
 0x123   : > { %988 = vpow2.f32 %v608_v30  ;;  %v752_v13 = vrot.slane %v751_v12, 1  ;;  %v628_v41 = vmul.f32 1.442695, %v599_v23  ;;  %v630_v48 = vmul.f32 1.442695, %v600_v46 }
 0x124   : > { %990 = vpow2.f32 %v610_v39  ;;  %v632_v54 = vmul.f32 1.442695, %v601_v43  ;;  %v578_v2 = vmul.f32 1.442695, %v577_v50  ;;  %v634_v43 = vld [vmem:[#allocation3] sm:$0x1] }
 0x125   : > { %992 = vpow2.f32 %v612_v52  ;;  %v753_v59 = vadd.f32 %v752_v13, %v751_v12  ;;  %v760_v30 = vld [vmem:[#allocation2] sm:$0x1] (!%p897_p6) }
 0x126   : > { %994 = vpow2.f32 %v614_v63 }
 0x127   : > { %v754_v18 = vadd.f32 %v753_v59, %v716_v47  ;;  %996 = vpow2.f32 %v616_v14 }
 0x128   : > { %998 = vpow2.f32 %v618_v17 }
 0x129   : > { %755 = vst [vmem:[#allocation4] sm:$0x1] %v754_v18  ;;  %1000 = vpow2.f32 %v620_v20 }
 0x12a   : > { %v983_v15 = vpop.eup %982  ;;  %1002 = vpow2.f32 %v622_v24 }
 0x12b   : > { %v985_v16 = vpop.eup %984  ;;  %1004 = vpow2.f32 %v624_v28 }
 0x12c   : > { %v636_v11 = vadd.f32 %v985_v16, %v983_v15  ;;  %v987_v19 = vpop.eup %986  ;;  %1006 = vpow2.f32 %v626_v32 }
 0x12d   : > { %v989_v22 = vpop.eup %988  ;;  %1008 = vpow2.f32 %v628_v41 }
 0x12e   : > { %v637_v21 = vadd.f32 %v987_v19, %v636_v11  ;;  %v991_v26 = vpop.eup %990  ;;  %1010 = vpow2.f32 %v630_v48 }
 0x12f   : > { %v993_v31 = vpop.eup %992  ;;  %1012 = vpow2.f32 %v632_v54 }
 0x130   : > { %v638_v25 = vadd.f32 %v989_v22, %v637_v21  ;;  %v995_v37 = vpop.eup %994  ;;  %1014 = vpow2.f32 %v578_v2  ;;  %v765_v10 = vld [vmem:[#allocation4] sm:$0x1] (!%p897_p6) }
 0x131   : > { %v997_v45 = vpop.eup %996 }
 0x132   : > { %v639_v29 = vadd.f32 %v991_v26, %v638_v25  ;;  %v999_v53 = vpop.eup %998 }
 0x133   : > { %v1001_v56 = vpop.eup %1000 }
 0x134   : > { %v640_v36 = vadd.f32 %v993_v31, %v639_v29  ;;  %v1003_v44 = vpop.eup %1002 }
 0x135   : > { %v1005_v61 = vpop.eup %1004 }
 0x136   : > { %v641_v34 = vadd.f32 %v995_v37, %v640_v36  ;;  %v1007_v38 = vpop.eup %1006 }
 0x137   : > { %v1009_v40 = vpop.eup %1008 }
 0x138   : > { %v642_v49 = vadd.f32 %v997_v45, %v641_v34  ;;  %v1011_v6 = vpop.eup %1010 }
 0x139   : > { %v1013_v3 = vpop.eup %1012 }
 0x13a   : > { %v643_v42 = vadd.f32 %v999_v53, %v642_v49  ;;  %v1015_v46 = vpop.eup %1014 }
 0x13b   : > { %v635_v55 = vmul.f32 %v1015_v46, %v634_v43 }
 0x13c   : > { %v644_v33 = vadd.f32 %v1001_v56, %v643_v42 }
 0x13e   : > { %v645_v58 = vadd.f32 %v1003_v44, %v644_v33 }
 0x140   : > { %v646_v62 = vadd.f32 %v1005_v61, %v645_v58 }
 0x142   : > { %v647_v0 = vadd.f32 %v1007_v38, %v646_v62 }
 0x144   : > { %v648_v4 = vadd.f32 %v1009_v40, %v647_v0 }
 0x146   : > { %v649_v57 = vadd.f32 %v1011_v6, %v648_v4 }
 0x148   : > { %v650_v1 = vadd.f32 %v1013_v3, %v649_v57 }
 0x14a   : > { %v651_v9 = vrot.slane %v650_v1, 4 }
 0x14c   : > { %v652_v27 = vadd.f32 %v651_v9, %v650_v1 }
 0x14e   : > { %v653_v51 = vrot.slane %v652_v27, 2 }
 0x150   : > { %v654_v23 = vadd.f32 %v653_v51, %v652_v27 }
 0x152   : > { %v655_v7 = vrot.slane %v654_v23, 1  ;;  %759 = sbr.rel (%p897_p6) target bundleno = 370 (0x172), region = 44 }
 0x154   : > { %v656_v35 = vadd.f32 %v655_v7, %v654_v23 }
 0x156   : > { %v657_v60 = vadd.f32 %v656_v35, %v635_v55 }
 0x158   : > { %658 = vst [vmem:[#allocation3] sm:$0x1] %v657_v60 }
 0x15f   : > { %v761_v8 = vld [vmem:[#allocation3] sm:$0x1] }
 0x160   : > { %1016 = vlog2.f32 %v761_v8 }
 0x16a   : > { %v1017_v5 = vpop.eup %1016 }
 0x16b   : > { %v763_v39 = vmul.f32 0.6931472, %v1017_v5 }
 0x16d   : > { %v764_v52 = vadd.f32 %v763_v39, %v760_v30 }
 0x16f   : > { %v766_v12 = vsub.f32 %v765_v10, %v764_v52 }
 0x171   : > { %767 = vst [vmem:[#allocation5] sm:$0x1] %v766_v12 }
 0x172 PF: > { %p1367_p7 = scmp.eq.s32.totalorder %s866_s18, 2  ;;  %s1075_s11 = smov [#allocation5]  }
 0x173   : > { %s777_s12 = sshll.u32 %s1075_s11, 4  ;;  %s778_s12 = int_to_ptr.vmem [resolvable:$true] %s777_s12 }
 0x174   : > { %s1018_s13 = scalar_lea.vmem %s778_s12, 16  ;;  %s1024_s14 = scalar_lea.vmem %s778_s12, 32 }
 0x175   : > { %p1019_p8 = scmp.ne.s32.totalorder %s778_s12, %s1018_s13  ;;  %p1025_p11 = scmp.lt.s32.totalorder %s778_s12, %s778_s12 }
 0x176   : > { %p1026_p12 = scmp.lt.s32.totalorder %s1024_s14, %s1018_s13 }
 0x177   : > { %p1020_p9 = pnand %p1019_p8, %p1367_p7 }
 0x178   : > { %p1027_p13 = por %p1026_p12, %p1025_p11 }
 0x179   : > { %p1021_p10 = pneg %p1020_p9 }
 0x17b   : > { %p1028_p0 = pnand %p1027_p13, %p1021_p10 }
 0x17d   : > { %1031 = shalt.err (!%p1028_p0)
}
 0x17e   : > { %s1032_s20 = scalar_lea.hbm %s1406_s4, 16 }
 0x17f   : > { %p1033_p1 = scmp.ne.s32.totalorder %s1406_s4, %s1032_s20  ;;  %p1038_p4 = scmp.lt.u32.totalorder %s1032_s20, %s1406_s4 }
 0x181   : > { %p1034_p2 = pnand %p1033_p1, %p1367_p7 }
 0x183   : > { %p1035_p3 = pneg %p1034_p2 }
 0x185   : > { %p1040_p5 = pnand %p1038_p4, %p1035_p3 }
 0x187   : > { %1043 = shalt.err (!%p1040_p5)
}
 0x188   : > { %937 = dma.vmem_to_hbm [thread:$0]  (%p1367_p7), %s778_s12, 16, %s1406_s4, [#allocation6]  }
 0x189   : > { %1057 = dma.done.wait (%p1367_p7), [#allocation6], 16  }
 0x18a   : > { %1059 = vsyncadd (%p1367_p7), [#allocation6], 4294967280 }
 0x18b PF: > { %s15_s17 = sadd.s32 1, %s1070_s17   ;;  %s1408_s15 = smov %s1066_s16 }
 0x18c   : > { %p12_p6 = scmp.ge.s32.totalorder %s15_s17, 5   ;;  %s1409_s16 = smov %s1411_s19 }
 0x18e   :  { %14 = sbr.rel (!%p12_p6) target bundleno = 2 (0x2), region = 81 }
 0x195   :  { %790 = vsyncpa [#allocation6], 1 }
 0x196   :  { %792 = vsyncpa [#allocation6 + $0x1], 1 }

</bundles_post_ra>
